<compile_context>
chip_gen: v6e
topology: v6e:2x2x1
jax: 0.10.0
libtpu: 0.0.40
codegen_flags: <defaults>
</compile_context>

<pallas_src>
import jax
import jax.numpy as jnp
from jax.experimental import pallas as pl
from jax.experimental.pallas import tpu as pltpu

_TARGET_TILE_BYTES = 4 * 1024 * 1024   # per-buffer VMEM tile target (~4 MiB)
_VMEM_LIMIT_BYTES = 32 * 1024 * 1024   # 2x in + 2x out double buffers + slack
_LANES = (1024, 512, 256, 128)         # preferred lane-dense last dims


def _scale_kernel(s_ref, x_ref, o_ref):
    # s_ref: (1,1) float32 scalar in SMEM.  x_ref / o_ref: VMEM tiles.
    # VPU work is free filler under the streaming DMAs; compute in f32 and cast
    # once so sub-32-bit inputs are not double-rounded.
    o_ref[...] = (x_ref[...].astype(jnp.float32) * s_ref[0, 0]).astype(o_ref.dtype)


def _round_up(v, m):
    return -(-v // m) * m


def _scale_2d(x2d, s, out_dtype):
    """Run the scaling kernel over a 2-D view, tiling both axes as needed."""
    rows, cols = x2d.shape
    itemsize = x2d.dtype.itemsize
    # Sublane pack: 8 for 32-bit, 16 for 16-bit, 32 for 8-bit dtypes.
    pack = max(8, 8 * (4 // max(1, itemsize)))

    # Lane-axis block: keep the full last dim unless even a pack-high slab of it
    # blows the tile budget (VMEM footprint counts the 128-lane padding).
    cols_pad = _round_up(cols, 128)
    if cols_pad * pack * itemsize <= _TARGET_TILE_BYTES:
        bc = cols                                               # full last dim (exempt)
    else:
        bc = max(128, (_TARGET_TILE_BYTES // (pack * itemsize)) // 128 * 128)
    bc_pad = _round_up(bc, 128)

    # Row-axis block sized by bytes, rounded to the dtype's sublane pack.
    br = max(pack, (_TARGET_TILE_BYTES // (bc_pad * itemsize)) // pack * pack)
    if br >= rows:
        br = rows                                               # full rows (exempt)
        # Megacore: give v7x's two TensorCores >=2 blocks on medium tensors.
        if bc == cols and rows >= 2 * pack:
            br = _round_up(pl.cdiv(rows, 2), pack)

    grid = (pl.cdiv(rows, br), pl.cdiv(cols, bc))
    return pl.pallas_call(
        _scale_kernel,
        out_shape=jax.ShapeDtypeStruct((rows, cols), out_dtype),
        grid=grid,
        in_specs=[
            pl.BlockSpec(memory_space=pltpu.MemorySpace.SMEM),   # (1,1) temperature
            pl.BlockSpec((br, bc), lambda i, j: (i, j)),         # streamed input tiles
        ],
        out_specs=pl.BlockSpec((br, bc), lambda i, j: (i, j)),
        compiler_params=pltpu.CompilerParams(
            dimension_semantics=("parallel", "parallel"),        # megacore split on v7x
            vmem_limit_bytes=_VMEM_LIMIT_BYTES,
        ),
    )(s, x2d)


def temperature_scale(x, scaler):
    """Pallas TPU implementation of TemperatureScaler.forward: x * scaler."""
    x = jnp.asarray(x)
    # Torch promotion with a 0-dim float tensor: float inputs keep their dtype,
    # integer inputs promote to float32.
    out_dtype = x.dtype if jnp.issubdtype(x.dtype, jnp.floating) else jnp.float32
    if x.size == 0:
        return x.astype(out_dtype)

    s = jnp.asarray(scaler, dtype=jnp.float32).reshape(1, 1)
    n = x.size

    # Zero-copy 2-D view.  Prefer a lane-dense (rows, lane) slab; otherwise keep
    # the original trailing dim as the lane axis.  No padding / slicing needed:
    # ragged final blocks are masked by Pallas.
    lane = next((l for l in _LANES if n % l == 0), None)
    if lane is not None:
        x2d = x.reshape(n // lane, lane)
    elif x.ndim >= 2:
        x2d = x.reshape(-1, x.shape[-1])
    else:
        x2d = x.reshape(1, n)

    out2d = _scale_2d(x2d, s, out_dtype)
    return out2d.reshape(x.shape)


if __name__ == "__main__":
    # Deterministic parameter init (module __init__: scaler = torch.tensor(init_val)).
    init_val = 1.5
    k1, k2, k3, k4 = jax.random.split(jax.random.PRNGKey(0), 4)

    # Primary check: module-sized NCHW input (B=2, C=4, H=W=16).
    x = jax.random.normal(k1, (2, 4, 16, 16), dtype=jnp.float32)
    out = jax.block_until_ready(temperature_scale(x, init_val))
    ref = x * jnp.float32(init_val)
    assert out.shape == x.shape and out.dtype == x.dtype
    assert jnp.allclose(out, ref, atol=1e-6, rtol=1e-6), "mismatch (base)"

    # Ragged element count (not a multiple of 128): masked tail block, no pad/slice.
    x2 = jax.random.normal(k2, (2, 3, 15, 17), dtype=jnp.float32)
    out2 = jax.block_until_ready(temperature_scale(x2, init_val))
    assert jnp.allclose(out2, x2 * jnp.float32(init_val), atol=1e-6, rtol=1e-6), \
        "mismatch (ragged)"

    # Multi-block pipelined path: grid > 1.
    x3 = jax.random.normal(k3, (8, 16, 64, 65), dtype=jnp.float32)
    out3 = jax.block_until_ready(temperature_scale(x3, init_val))
    assert jnp.allclose(out3, x3 * jnp.float32(init_val), atol=1e-6, rtol=1e-6), \
        "mismatch (multi-block)"

    # Sub-32-bit dtype path: dtype-aware pack, f32 compute, single rounding.
    x4 = jax.random.normal(k4, (2, 4, 16, 16), dtype=jnp.float32).astype(jnp.bfloat16)
    out4 = jax.block_until_ready(temperature_scale(x4, init_val))
    ref4 = (x4.astype(jnp.float32) * jnp.float32(init_val)).astype(jnp.bfloat16)
    assert out4.dtype == jnp.bfloat16
    assert jnp.allclose(out4.astype(jnp.float32), ref4.astype(jnp.float32),
                        atol=2e-2, rtol=2e-2), "mismatch (bf16)"

    print("KERNEL_OK")
</pallas_src>

<mosaic_0001>
module attributes {stable_mosaic.version = 11 : i64} {
  func.func @_scale_kernel(%arg0: i32, %arg1: i32, %arg2: memref<1x1xf32, #tpu.memory_space<smem>>, %arg3: memref<2x1024xf32, #tpu.memory_space<vmem>>, %arg4: memref<2x1024xf32, #tpu.memory_space<vmem>>) attributes {dimension_semantics = [#tpu.dimension_semantics<parallel>, #tpu.dimension_semantics<parallel>], iteration_bounds = array<i64: 1, 1>, scalar_prefetch = 0 : i64, scratch_operands = 0 : i64, tpu.core_type = #tpu.core_type<tc>, window_params = [{transform_indices = @transform_0, window_bounds = array<i64: 1, 1>}, {transform_indices = @transform_1, window_bounds = array<i64: 2, 1024>}, {transform_indices = @transform_2, window_bounds = array<i64: 2, 1024>}]} {
    %c0 = arith.constant 0 : index
    %c0_0 = arith.constant 0 : index
    %0 = vector.load %arg3[%c0, %c0_0] : memref<2x1024xf32, #tpu.memory_space<vmem>>, vector<2x1024xf32>
    %c0_1 = arith.constant 0 : index
    %c0_2 = arith.constant 0 : index
    %1 = memref.load %arg2[%c0_1, %c0_2] : memref<1x1xf32, #tpu.memory_space<smem>>
    %2 = vector.broadcast %1 : f32 to vector<2x1024xf32>
    %3 = arith.mulf %0, %2 : vector<2x1024xf32>
    %c0_3 = arith.constant 0 : index
    %c0_4 = arith.constant 0 : index
    %4 = vector.load %arg4[%c0_3, %c0_4] : memref<2x1024xf32, #tpu.memory_space<vmem>>, vector<2x1024xf32>
    tpu.vector_store %arg4[%c0_3, %c0_4], %3 {strides = array<i32>} : memref<2x1024xf32, #tpu.memory_space<vmem>>, vector<2x1024xf32>,
    return
  }
  func.func @transform_0(%arg0: i32, %arg1: i32) -> (i32, i32) {
    %c0_i32 = arith.constant 0 : i32
    %c0_i32_0 = arith.constant 0 : i32
    %c0_i32_1 = arith.constant 0 : i32
    return %c0_i32, %c0_i32_0 : i32, i32
  }
  func.func @transform_1(%arg0: i32, %arg1: i32) -> (i32, i32) {
    %c0_i32 = arith.constant 0 : i32
    return %arg0, %arg1 : i32, i32
  }
  func.func @transform_2(%arg0: i32, %arg1: i32) -> (i32, i32) {
    %c0_i32 = arith.constant 0 : i32
    return %arg0, %arg1 : i32, i32
  }
}

</mosaic_0001>

<bundles_post_ra>
// kernel: tpu_custom_call.1
= control target key start
LH: loop header
LB: loop body
LE: loop exit
PB: predicated region body
PF: predicated region fallthrough
CT: control target
= control target key end

     0   :  { %8 = vsyncpa [#allocation4], 0  ;;  %s120_s0 = inlined_call_operand.<no memory space> [shape: f32[1,1], index: 0, kind: input, shape index: {}]   ;;  %s121_s1 = inlined_call_operand.hbm [shape: f32[2,1024], index: 1, kind: input, shape index: {}]   ;;  %s122_s2 = inlined_call_operand.hbm [shape: f32[2,1024], index: 2, kind: output, shape index: {}]  }
   0x1   :  { %9 = vsyncpa [#allocation5], 0  ;;  %s94_s9 = smov [#allocation3]  }
   0x2   :  { %s18_s10 = sshll.u32 %s94_s9, 4  ;;  %s19_s10 = int_to_ptr.vmem [resolvable:$true] %s18_s10 }
   0x3   :  { %s58_s11 = scalar_lea.vmem %s19_s10, 256  ;;  %p63_p1 = scmp.lt.s32.totalorder %s19_s10, %s19_s10 }
   0x4   :  { %p59_p0 = scmp.ne.s32.totalorder %s19_s10, %s58_s11  ;;  %p64_p2 = scmp.lt.s32.totalorder %s58_s11, %s58_s11 }
   0x6   :  { %p65_p3 = por %p64_p2, %p63_p1 }
   0x8   :  { %p66_p4 = pnand %p65_p3, %p59_p0 }
   0xa   :  { %69 = shalt.err (!%p66_p4)
}
   0xb   :  { %21 = dma.hbm_to_vmem [thread:$0]  %s121_s1, 256, %s19_s10, [#allocation4]  }
   0xc   :  { %90 = dma.done.wait [#allocation4], 256  }
   0xd   :  { %91 = vsyncadd [#allocation4], 4294967040  ;;  %v28_v0 = vstv %s120_s0  ;;  %s95_s16 = smov [#allocation6]   ;;  %v25_v1 = vld [vmem:[#allocation3] sm:$0xff]  ;;  %v26_v2 = vld [vmem:[#allocation3 + $0x8] sm:$0xff] }
   0xe   :  { %s39_s17 = sshll.u32 %s95_s16, 4  ;;  %v29_v3 = vmul.f32 %v28_v0, %v25_v1  ;;  %v30_v4 = vmul.f32 %v28_v0, %v26_v2  ;;  %s40_s17 = int_to_ptr.vmem [resolvable:$true] %s39_s17 }
   0xf   :  { %s70_s18 = scalar_lea.vmem %s40_s17, 256  ;;  %p75_p6 = scmp.lt.s32.totalorder %s40_s17, %s40_s17 }
  0x10   :  { %31 = vst [vmem:[#allocation6] sm:$0xff] %v29_v3  ;;  %32 = vst [vmem:[#allocation6 + $0x8] sm:$0xff] %v30_v4  ;;  %p71_p5 = scmp.ne.s32.totalorder %s40_s17, %s70_s18  ;;  %p76_p7 = scmp.lt.s32.totalorder %s70_s18, %s70_s18 }
  0x12   :  { %p77_p8 = por %p76_p7, %p75_p6 }
  0x14   :  { %p78_p9 = pnand %p77_p8, %p71_p5 }
  0x16   :  { %81 = shalt.err (!%p78_p9)
}
  0x17   :  { %42 = dma.vmem_to_hbm [thread:$0]  %s40_s17, 256, %s122_s2, [#allocation5]  }
  0x18   :  { %92 = dma.done.wait [#allocation5], 256  }
  0x19   :  { %93 = vsyncadd [#allocation5], 4294967040 }
  0x1a   :  { %46 = vsyncpa [#allocation4], 1 }
  0x1b   :  { %47 = vsyncpa [#allocation5], 1 }

</bundles_post_ra>
